<compile_context>
chip_gen: v7x
topology: tpu7x:2x2x1
jax: 0.10.0
libtpu: 0.0.40
codegen_flags: <defaults>
</compile_context>

<pallas_src>
import functools

import jax
import jax.numpy as jnp
from jax import lax
from jax.experimental import pallas as pl
from jax.experimental.pallas import tpu as pltpu

_OUT_SUBLANES = 8
_OUT_LANES = 128


def _triplet_kernel(a_ref, p_ref, n_ref, o_ref, acc_ref, *, margin, distance,
                    total_rows, block_rows, tiles_per_split):
    s = pl.program_id(0)          # core-split index
    t = pl.program_id(1)          # per-split tile index ("arbitrary" reduction)

    @pl.when(t == 0)
    def _init():
        acc_ref[...] = jnp.zeros_like(acc_ref)

    a = a_ref[...].astype(jnp.float32)
    p = p_ref[...].astype(jnp.float32)
    n = n_ref[...].astype(jnp.float32)

    if distance == "euclidean":
        # torch.nn.functional.pairwise_distance(p=2, eps=1e-6):
        #   d = || x1 - x2 + eps ||_2   (row-wise)
        eps = 1e-6
        dp = a - p + eps
        dn = a - n + eps
        pos_d = jnp.sqrt(jnp.sum(dp * dp, axis=-1, keepdims=True))   # (TB, 1)
        neg_d = jnp.sqrt(jnp.sum(dn * dn, axis=-1, keepdims=True))   # (TB, 1)
    elif distance == "cosine":
        # 1 - F.cosine_similarity(x1, x2, dim=1, eps=1e-8), with per-norm
        # clamping (x / max(||x||, eps)) like torch.  ||a||^2 is computed once
        # and reused; rsqrt runs on the EUP slot (nearly free).
        eps = 1e-8
        na2 = jnp.sum(a * a, axis=-1, keepdims=True)
        np2 = jnp.sum(p * p, axis=-1, keepdims=True)
        nn2 = jnp.sum(n * n, axis=-1, keepdims=True)
        dap = jnp.sum(a * p, axis=-1, keepdims=True)
        dan = jnp.sum(a * n, axis=-1, keepdims=True)
        inv_na = lax.rsqrt(jnp.maximum(na2, eps * eps))
        inv_np = lax.rsqrt(jnp.maximum(np2, eps * eps))
        inv_nn = lax.rsqrt(jnp.maximum(nn2, eps * eps))
        pos_d = 1.0 - dap * inv_na * inv_np
        neg_d = 1.0 - dan * inv_na * inv_nn
    else:
        raise ValueError(f"Unsupported distance metric:{distance}")

    hinge = jnp.maximum(pos_d - neg_d + margin, 0.0)                 # (TB, 1)

    # Mask rows beyond the true batch: ragged last tile and clamped overrun
    # tiles of the core split contribute exactly zero.  The mask uses the
    # *unclamped* global tile index while the index_map clamps the fetch.
    g = s * tiles_per_split + t
    row0 = g * block_rows
    rows = row0 + lax.broadcasted_iota(jnp.int32, hinge.shape, 0)
    hinge = jnp.where(rows < total_rows, hinge, 0.0)

    # Row-resident accumulation: pure elementwise VPU adds per step; the
    # cross-sublane reduce happens once at finalize.  Numerically safer than
    # a single (1,1) running scalar and free under the memory-bound regime.
    acc_ref[...] += hinge                                            # (TB, 1)

    @pl.when(t == pl.num_programs(1) - 1)
    def _finalize():
        total = jnp.sum(acc_ref[...], axis=0, keepdims=True)         # (1, 1)
        # Broadcast over the (8,128) output tile to keep the output BlockSpec
        # tile-aligned; the wrapper reads element [0, 0] of each split block.
        o_ref[...] = jnp.broadcast_to(total, o_ref.shape)


def _tpu_hw_info():
    """(vmem_capacity_bytes, tensorcores_per_chip) with conservative fallbacks."""
    vmem_cap = 64 * 1024 * 1024          # safe for every generation (v7x per-TC)
    num_cores = 1
    try:
        info = pltpu.get_tpu_info()
        cap = int(getattr(info, "vmem_capacity_bytes", 0))
        if cap > 0:
            vmem_cap = cap
    except Exception:
        pass
    try:
        kind = jax.devices()[0].device_kind.lower()
        if "v7" in kind:                 # v7x packs 2 TensorCores per chip
            num_cores = 2
    except Exception:
        pass
    return vmem_cap, num_cores


def _pick_block_rows(batch, dim, itemsize, vmem_cap, buffer_count):
    """Largest sublane-packing-aligned batch tile that fits the VMEM budget."""
    # Sublane packing: 8 rows for 32-bit, 16 for bf16, 32 for int8/fp8.
    align = max(8, 32 // itemsize)
    if batch <= align:
        return batch                      # single block == full batch dim
    # Combined budget: streamed input buffers (3 arrays x buffer_count) plus
    # in-kernel f32 upcast temporaries (~6 whole-tile f32 arrays: a/p/n copies
    # + diffs/products) plus the lane-padded (TB,1)->(TB,128) f32 accumulator.
    # Leave ~40% of physical VMEM as headroom for compiler scratch / spills.
    budget = int(vmem_cap * 0.6)
    per_row = (3 * buffer_count * dim * itemsize      # streamed input buffers
               + 6 * dim * 4                          # f32 upcast temporaries
               + _OUT_LANES * 4)                      # lane-padded accumulator
    tb = budget // per_row
    # Cap each streamed input block at ~4 MiB: long enough to amortize the
    # ~0.35 us per-grid-step overhead, small enough to bound spill scratch.
    tb = min(tb, (4 * 1024 * 1024) // (dim * itemsize))
    tb = max(align, min(int(tb), batch))
    return (tb // align) * align


def triplet_loss(anchor, positive, negative, *, margin=1.0,
                 distance="euclidean", block_rows=None, buffer_count=2):
    """Pallas TPU triplet loss.  anchor/positive/negative: (B, D). Returns scalar."""
    if distance not in ("euclidean", "cosine"):
        raise ValueError(f"Unsupported distance metric:{distance}")
    B, D = anchor.shape
    itemsize = jnp.dtype(anchor.dtype).itemsize

    vmem_cap, num_cores = _tpu_hw_info()
    tb = block_rows if block_rows is not None else _pick_block_rows(
        B, D, itemsize, vmem_cap, buffer_count)
    tb = min(tb, B)
    num_tiles = pl.cdiv(B, tb)

    # Real 2-way TensorCore split only on 2-TC chips (v7x): per-TC HBM
    # bandwidth is the whole game there.  On single-TC v5e/v6e a fake split is
    # just a serial loop plus a wasted clamped overrun fetch, so skip it.
    ns = 2 if (num_cores == 2 and num_tiles >= 2) else 1
    tiles_per_split = pl.cdiv(num_tiles, ns)

    def in_map(s, t):
        # Clamp so overrun steps of the core split re-fetch the last real tile
        # (their contribution is masked to zero in-kernel).
        return (jnp.minimum(s * tiles_per_split + t, num_tiles - 1), 0)

    if buffer_count == 2:
        in_block = pl.BlockSpec((tb, D), in_map)
    else:
        # Pipeline-depth sweep knob (perf review): e.g. buffer_count=3 keeps
        # the next DMA in flight across the wait boundary.
        in_block = pl.BlockSpec((tb, D), in_map,
                                pipeline_mode=pl.Buffered(buffer_count))

    kernel = functools.partial(
        _triplet_kernel, margin=float(margin), distance=distance,
        total_rows=B, block_rows=tb, tiles_per_split=tiles_per_split)

    if ns == 2:
        # Explicit per-core sharding of the leading axis on 2-TC chips.
        dim_sem = (pltpu.CORE_PARALLEL, pltpu.ARBITRARY)
    else:
        dim_sem = ("arbitrary", "arbitrary")

    # Generation-aware scoped-VMEM limit (e.g. 96 MiB on v5e/v6e, 48 MiB v7x).
    vmem_limit = max(32 * 1024 * 1024, (vmem_cap * 3) // 4)

    flops_per_elem = 8 if distance == "euclidean" else 10
    trans_per_row = 2 if distance == "euclidean" else 3
    cost = pl.CostEstimate(
        flops=flops_per_elem * B * D,
        transcendentals=trans_per_row * B,
        bytes_accessed=3 * B * D * itemsize + ns * _OUT_SUBLANES * _OUT_LANES * 4)

    out = pl.pallas_call(
        kernel,
        out_shape=jax.ShapeDtypeStruct((ns * _OUT_SUBLANES, _OUT_LANES),
                                       jnp.float32),
        grid=(ns, tiles_per_split),
        in_specs=[in_block, in_block, in_block],
        out_specs=pl.BlockSpec((_OUT_SUBLANES, _OUT_LANES), lambda s, t: (s, 0)),
        scratch_shapes=[pltpu.VMEM((tb, 1), jnp.float32)],
        compiler_params=pltpu.CompilerParams(
            dimension_semantics=dim_sem, vmem_limit_bytes=int(vmem_limit)),
        cost_estimate=cost,
    )(anchor, positive, negative)

    # One partial sum per core split lives at row s*8, lane 0.
    partials = out[0::_OUT_SUBLANES, 0]            # (ns,)
    return jnp.sum(partials) / B


# ---------------------------------------------------------------------------
# Plain-JAX references mirroring the PyTorch semantics (for verification).
# ---------------------------------------------------------------------------
def _ref_euclidean(a, p, n, margin=1.0, eps=1e-6):
    a, p, n = (x.astype(jnp.float32) for x in (a, p, n))
    dp = jnp.sqrt(jnp.sum((a - p + eps) ** 2, axis=-1))
    dn = jnp.sqrt(jnp.sum((a - n + eps) ** 2, axis=-1))
    return jnp.mean(jnp.maximum(dp - dn + margin, 0.0))


def _ref_cosine(a, p, n, margin=1.0, eps=1e-8):
    a, p, n = (x.astype(jnp.float32) for x in (a, p, n))
    def cos(x, y):
        nx = jnp.maximum(jnp.sqrt(jnp.sum(x * x, axis=-1)), eps)
        ny = jnp.maximum(jnp.sqrt(jnp.sum(y * y, axis=-1)), eps)
        return jnp.sum(x * y, axis=-1) / (nx * ny)
    dp = 1.0 - cos(a, p)
    dn = 1.0 - cos(a, n)
    return jnp.mean(jnp.maximum(dp - dn + margin, 0.0))


if __name__ == "__main__":
    key = jax.random.PRNGKey(0)
    k1, k2, k3 = jax.random.split(key, 3)

    # Small but lane-dense demo shapes: batch=24 embeddings of hidden=128.
    B, D = 24, 128
    anchor = jax.random.normal(k1, (B, D), dtype=jnp.float32)
    positive = jax.random.normal(k2, (B, D), dtype=jnp.float32)
    negative = jax.random.normal(k3, (B, D), dtype=jnp.float32)

    # Force small tiles so the demo exercises multi-tile pipelining, the core
    # split (on 2-TC chips), and the masked/clamped overrun tile.
    loss_euc = triplet_loss(anchor, positive, negative, margin=1.0,
                            distance="euclidean", block_rows=8)
    loss_cos = triplet_loss(anchor, positive, negative, margin=1.0,
                            distance="cosine", block_rows=8)
    jax.block_until_ready((loss_euc, loss_cos))

    ref_euc = _ref_euclidean(anchor, positive, negative, margin=1.0)
    ref_cos = _ref_cosine(anchor, positive, negative, margin=1.0)
    assert jnp.allclose(loss_euc, ref_euc, atol=1e-4, rtol=1e-5), (loss_euc, ref_euc)
    assert jnp.allclose(loss_cos, ref_cos, atol=1e-4, rtol=1e-5), (loss_cos, ref_cos)

    # Auto tile size + ragged batch (B not a multiple of the sublane tile).
    B2 = 12
    a2 = jax.random.normal(k1, (B2, D), dtype=jnp.float32)
    p2 = jax.random.normal(k2, (B2, D), dtype=jnp.float32)
    n2 = jax.random.normal(k3, (B2, D), dtype=jnp.float32)
    loss2 = triplet_loss(a2, p2, n2, margin=1.0, distance="euclidean")
    jax.block_until_ready(loss2)
    ref2 = _ref_euclidean(a2, p2, n2, margin=1.0)
    assert jnp.allclose(loss2, ref2, atol=1e-4, rtol=1e-5), (loss2, ref2)

    # bf16 inputs: halves HBM traffic; tiles auto-align to 16-row packing and
    # the ragged last tile (24 % 16 != 0) is masked in-kernel.
    a3 = anchor.astype(jnp.bfloat16)
    p3 = positive.astype(jnp.bfloat16)
    n3 = negative.astype(jnp.bfloat16)
    loss3 = triplet_loss(a3, p3, n3, margin=1.0, distance="euclidean")
    jax.block_until_ready(loss3)
    ref3 = _ref_euclidean(a3, p3, n3, margin=1.0)
    assert jnp.allclose(loss3, ref3, atol=1e-3, rtol=1e-4), (loss3, ref3)

    print("KERNEL_OK")
</pallas_src>

<mosaic_0001>
module attributes {stable_mosaic.version = 11 : i64} {
  func.func @_triplet_kernel(%arg0: i32, %arg1: i32, %arg2: memref<8x128xf32, #tpu.memory_space<vmem>>, %arg3: memref<8x128xf32, #tpu.memory_space<vmem>>, %arg4: memref<8x128xf32, #tpu.memory_space<vmem>>, %arg5: memref<8x128xf32, #tpu.memory_space<vmem>>, %arg6: memref<8x1xf32, #tpu.memory_space<vmem>>) attributes {dimension_semantics = [#tpu.dimension_semantics<arbitrary>, #tpu.dimension_semantics<arbitrary>], iteration_bounds = array<i64: 1, 3>, scalar_prefetch = 0 : i64, scratch_operands = 1 : i64, tpu.core_type = #tpu.core_type<tc>, window_params = [{transform_indices = @transform_0, window_bounds = array<i64: 8, 128>}, {transform_indices = @transform_1, window_bounds = array<i64: 8, 128>}, {transform_indices = @transform_2, window_bounds = array<i64: 8, 128>}, {transform_indices = @transform_3, window_bounds = array<i64: 8, 128>}]} {
    %c0_i32 = arith.constant 0 : i32
    %0 = arith.cmpi eq, %arg1, %c0_i32 : i32
    %1 = arith.extui %0 : i1 to i32
    %c0_i32_0 = arith.constant 0 : i32
    %2 = arith.cmpi ne, %1, %c0_i32_0 : i32
    scf.if %2 {
      %cst_17 = arith.constant 0.000000e+00 : f32
      %41 = vector.broadcast %cst_17 : f32 to vector<8x1xf32>
      %c0_18 = arith.constant 0 : index
      %c0_19 = arith.constant 0 : index
      %42 = vector.load %arg6[%c0_18, %c0_19] : memref<8x1xf32, #tpu.memory_space<vmem>>, vector<8x1xf32>
      tpu.vector_store %arg6[%c0_18, %c0_19], %41 {strides = array<i32>} : memref<8x1xf32, #tpu.memory_space<vmem>>, vector<8x1xf32>,
    } else {
    }
    %c0 = arith.constant 0 : index
    %c0_1 = arith.constant 0 : index
    %3 = vector.load %arg2[%c0, %c0_1] : memref<8x128xf32, #tpu.memory_space<vmem>>, vector<8x128xf32>
    %c0_2 = arith.constant 0 : index
    %c0_3 = arith.constant 0 : index
    %4 = vector.load %arg3[%c0_2, %c0_3] : memref<8x128xf32, #tpu.memory_space<vmem>>, vector<8x128xf32>
    %c0_4 = arith.constant 0 : index
    %c0_5 = arith.constant 0 : index
    %5 = vector.load %arg4[%c0_4, %c0_5] : memref<8x128xf32, #tpu.memory_space<vmem>>, vector<8x128xf32>
    %6 = arith.subf %3, %4 : vector<8x128xf32>
    %cst = arith.constant 9.99999997E-7 : f32
    %7 = vector.broadcast %cst : f32 to vector<8x128xf32>
    %8 = arith.addf %6, %7 : vector<8x128xf32>
    %9 = arith.subf %3, %5 : vector<8x128xf32>
    %cst_6 = arith.constant 9.99999997E-7 : f32
    %10 = vector.broadcast %cst_6 : f32 to vector<8x128xf32>
    %11 = arith.addf %9, %10 : vector<8x128xf32>
    %12 = arith.mulf %8, %8 : vector<8x128xf32>
    %cst_7 = arith.constant dense<0.000000e+00> : vector<8xf32>
    %13 = vector.multi_reduction <add>, %12, %cst_7 [1] : vector<8x128xf32> to vector<8xf32>
    %14 = vector.shape_cast %13 : vector<8xf32> to vector<8x1xf32>
    %15 = math.sqrt %14 : vector<8x1xf32>
    %16 = arith.mulf %11, %11 : vector<8x128xf32>
    %cst_8 = arith.constant dense<0.000000e+00> : vector<8xf32>
    %17 = vector.multi_reduction <add>, %16, %cst_8 [1] : vector<8x128xf32> to vector<8xf32>
    %18 = vector.shape_cast %17 : vector<8xf32> to vector<8x1xf32>
    %19 = math.sqrt %18 : vector<8x1xf32>
    %20 = arith.subf %15, %19 : vector<8x1xf32>
    %cst_9 = arith.constant 1.000000e+00 : f32
    %21 = vector.broadcast %cst_9 : f32 to vector<8x1xf32>
    %22 = arith.addf %20, %21 : vector<8x1xf32>
    %cst_10 = arith.constant 0.000000e+00 : f32
    %23 = vector.broadcast %cst_10 : f32 to vector<8x1xf32>
    %24 = arith.maximumf %22, %23 : vector<8x1xf32>
    %c3_i32 = arith.constant 3 : i32
    %25 = arith.muli %arg0, %c3_i32 : i32
    %26 = arith.addi %25, %arg1 : i32
    %c8_i32 = arith.constant 8 : i32
    %27 = arith.muli %26, %c8_i32 : i32
    %28 = tpu.iota {dimensions = array<i32: 0>} : vector<8x1xi32>
    %29 = vector.broadcast %27 : i32 to vector<8x1xi32>
    %30 = arith.addi %29, %28 : vector<8x1xi32>
    %c24_i32 = arith.constant 24 : i32
    %31 = vector.broadcast %c24_i32 : i32 to vector<8x1xi32>
    %32 = arith.cmpi slt, %30, %31 : vector<8x1xi32>
    %cst_11 = arith.constant 0.000000e+00 : f32
    %33 = vector.broadcast %cst_11 : f32 to vector<8x1xf32>
    %34 = arith.select %32, %24, %33 : vector<8x1xi1>, vector<8x1xf32>
    %c0_12 = arith.constant 0 : index
    %c0_13 = arith.constant 0 : index
    %35 = vector.load %arg6[%c0_12, %c0_13] : memref<8x1xf32, #tpu.memory_space<vmem>>, vector<8x1xf32>
    %36 = arith.addf %35, %34 : vector<8x1xf32>
    %c0_14 = arith.constant 0 : index
    %c0_15 = arith.constant 0 : index
    %37 = vector.load %arg6[%c0_14, %c0_15] : memref<8x1xf32, #tpu.memory_space<vmem>>, vector<8x1xf32>
    tpu.vector_store %arg6[%c0_14, %c0_15], %36 {strides = array<i32>} : memref<8x1xf32, #tpu.memory_space<vmem>>, vector<8x1xf32>,
    %c2_i32 = arith.constant 2 : i32
    %38 = arith.cmpi eq, %arg1, %c2_i32 : i32
    %39 = arith.extui %38 : i1 to i32
    %c0_i32_16 = arith.constant 0 : i32
    %40 = arith.cmpi ne, %39, %c0_i32_16 : i32
    scf.if %40 {
      %c0_17 = arith.constant 0 : index
      %c0_18 = arith.constant 0 : index
      %41 = vector.load %arg6[%c0_17, %c0_18] : memref<8x1xf32, #tpu.memory_space<vmem>>, vector<8x1xf32>
      %cst_19 = arith.constant dense<0.000000e+00> : vector<1xf32>
      %42 = vector.multi_reduction <add>, %41, %cst_19 [0] : vector<8x1xf32> to vector<1xf32>
      %43 = vector.shape_cast %42 : vector<1xf32> to vector<1x1xf32>
      %44 = vector.shape_cast %43 : vector<1x1xf32> to vector<1x1xf32>
      %45 = vector.broadcast %44 : vector<1x1xf32> to vector<8x128xf32>
      %c0_20 = arith.constant 0 : index
      %c0_21 = arith.constant 0 : index
      %46 = vector.load %arg5[%c0_20, %c0_21] : memref<8x128xf32, #tpu.memory_space<vmem>>, vector<8x128xf32>
      tpu.vector_store %arg5[%c0_20, %c0_21], %45 {strides = array<i32>} : memref<8x128xf32, #tpu.memory_space<vmem>>, vector<8x128xf32>,
    } else {
    }
    return
  }
  func.func @transform_0(%arg0: i32, %arg1: i32) -> (i32, i32) {
    %c3_i32 = arith.constant 3 : i32
    %0 = arith.muli %arg0, %c3_i32 : i32
    %1 = arith.addi %0, %arg1 : i32
    %c2_i32 = arith.constant 2 : i32
    %2 = arith.minsi %1, %c2_i32 : i32
    %c0_i32 = arith.constant 0 : i32
    %c0_i32_0 = arith.constant 0 : i32
    return %2, %c0_i32 : i32, i32
  }
  func.func @transform_1(%arg0: i32, %arg1: i32) -> (i32, i32) {
    %c3_i32 = arith.constant 3 : i32
    %0 = arith.muli %arg0, %c3_i32 : i32
    %1 = arith.addi %0, %arg1 : i32
    %c2_i32 = arith.constant 2 : i32
    %2 = arith.minsi %1, %c2_i32 : i32
    %c0_i32 = arith.constant 0 : i32
    %c0_i32_0 = arith.constant 0 : i32
    return %2, %c0_i32 : i32, i32
  }
  func.func @transform_2(%arg0: i32, %arg1: i32) -> (i32, i32) {
    %c3_i32 = arith.constant 3 : i32
    %0 = arith.muli %arg0, %c3_i32 : i32
    %1 = arith.addi %0, %arg1 : i32
    %c2_i32 = arith.constant 2 : i32
    %2 = arith.minsi %1, %c2_i32 : i32
    %c0_i32 = arith.constant 0 : i32
    %c0_i32_0 = arith.constant 0 : i32
    return %2, %c0_i32 : i32, i32
  }
  func.func @transform_3(%arg0: i32, %arg1: i32) -> (i32, i32) {
    %c0_i32 = arith.constant 0 : i32
    %c0_i32_0 = arith.constant 0 : i32
    return %arg0, %c0_i32 : i32, i32
  }
}

</mosaic_0001>

<bundles_post_ra>
// kernel: tpu_custom_call.1
= control target key start
LH: loop header
LB: loop body
LE: loop exit
PB: predicated region body
PF: predicated region fallthrough
CT: control target
= control target key end

     0   :  { %8 = vsyncpa [#allocation4], 0  ;;  %s1009_s0 = inlined_call_operand.hbm [shape: f32[24,128], index: 0, kind: input, shape index: {}]   ;;  %s1010_s1 = inlined_call_operand.hbm [shape: f32[24,128], index: 1, kind: input, shape index: {}]   ;;  %s1011_s2 = inlined_call_operand.hbm [shape: f32[24,128], index: 2, kind: input, shape index: {}]   ;;  %s1012_s3 = inlined_call_operand.hbm [shape: f32[8,128], index: 3, kind: output, shape index: {}]  }
   0x1   :  { %10 = vsyncpa [#allocation4 + $0x1], 0 }
   0x2   :  { %11 = vsyncpa [#allocation7], 0 }
   0x3   :  { %13 = vsyncpa [#allocation7 + $0x1], 0 }
   0x4   :  { %14 = vsyncpa [#allocation5], 0  ;;  %s791_s12 = smov 0   ;;  %s793_s13 = smov 0  }
   0x5   :  { %s795_s14 = smov 0   ;;  %s797_s15 = smov 0  }
   0x6   :  { %s799_s16 = smov 0   ;;  %s801_s17 = smov 0  }
   0x7 LB: > { %s820_s18 = sadd.s32 4294967295, %s763_s17   ;;  %s29_s19 = sadd.s32 1, %s759_s16  ;;  %s763_s17 = sphi %s801_s17, %s20_s17   ;;  %s759_s16 = sphi %s799_s16, %s1029_s16   ;;  %s755_s15 = sphi %s797_s15, %s1028_s15   ;;  %s751_s14 = sphi %s795_s14, %s1027_s14   ;;  %s747_s13 = sphi %s793_s13, %s1026_s13   ;;  %s743_s12 = sphi %s791_s12, %s1025_s12  }
   0x8   : > { %p30_p0 = scmp.ge.s32.totalorder %s29_s19, 3  ;;  %p38_p1 = scmp.lt.s32.totalorder %s759_s16, 2 }
   0x9   : > { %s47_s20 = sadd.s32 1, %s751_s14  ;;  %p54_p2 = scmp.ne.s32.totalorder %s751_s14, %s747_s13 }
   0xa   : > { %s1031_s19 = smov (%p30_p0, %s29_s19), 0  ;;  %p55_p4 = scmp.eq.s32.totalorder %s763_s17, 0 }
   0xb   : > { %s39_s21 = scalar_select %p38_p1, %s759_s16, 2 }
   0xc   : > { %p42_p3 = scmp.lt.s32.totalorder %s1031_s19, 2  ;;  %p60_p5 = scmp.ne.s32.totalorder %s747_s13, %s743_s12 }
   0xd   : > { %p61_p6 = scmp.eq.s32.totalorder %s820_s18, 0  ;;  %p56_p7 = por %p55_p4, %p54_p2 }
   0xe   : > { %s43_s22 = scalar_select %p42_p3, %s1031_s19, 2 }
   0xf   : > { %p835_p8 = por %p61_p6, %p60_p5  ;;  %p530_p10 = scmp.lt.s32.totalorder %s763_s17, 3 }
  0x10   : > { %s44_s24 = ssub.s32 %s39_s21, %s43_s22  ;;  %s178_s25 = sand.u32 1, %s751_s14  }
  0x11   : > { %s1016_s23 = scalar_select %p835_p8, 1, 0 }
  0x12   : > { %p45_p9 = scmp.eq.s32.totalorder %s44_s24, 0  ;;  %s841_s26 = sshll.u32 %s39_s21, 7 }
  0x13   : > { %s848_s28 = sshll.u32 %s178_s25, 3  ;;  %p850_p11 = pnand %p530_p10, %p56_p7 }
  0x14   : > { %s844_s27 = scalar_select %p45_p9, %s751_s14, %s47_s20  }
  0x15   : > { %s1017_s29 = scalar_select %p850_p11, 1, 0 }
  0x16   : > { %s200_s30 = sand.u32 1, %s763_s17   ;;  %s859_s6 = scalar_lea.hbm %s1010_s1, %s841_s26 }
  0x17   : > { %s204_s7 = scalar_lea.vmem [#allocation6], %s848_s28  ;;  %s865_s9 = scalar_lea.sflag [#allocation7], %s200_s30 }
  0x18   : > { %s215_s8 = sshll.u32 %s204_s7, 4  ;;  %s589_s10 = scalar_lea.hbm %s859_s6, 128  ;;  %s862_s8 = int_to_ptr.vmem [resolvable:$true] %s215_s8 }
  0x19   : > { %p590_p13 = scmp.ne.s32.totalorder %s859_s6, %s589_s10  ;;  %p871_p0 = pneg %p850_p11 }
  0x1a   : > { %s594_s21 = scalar_lea.hbm %s1010_s1, 384  ;;  %p595_p3 = scmp.lt.u32.totalorder %s859_s6, %s1010_s1 }
  0x1b   : > { %p592_p1 = pnand %p871_p0, %p590_p13  ;;  %p596_p4 = scmp.lt.u32.totalorder %s594_s21, %s589_s10 }
  0x1c   : > { %p598_p6 = scmp.lt.u32.totalorder %s589_s10, %s859_s6 }
  0x1d   : > { %p593_p2 = pneg %p592_p1  ;;  %p597_p5 = por %p596_p4, %p595_p3 }
  0x1f   : > { %p599_p7 = por %p598_p6, %p597_p5 }
  0x21   : > { %p600_p9 = pnand %p599_p7, %p593_p2 }
  0x23   : > { %603 = shalt.err (!%p600_p9)
}
  0x24   : > { %s604_s30 = scalar_lea.vmem %s862_s8, 128  ;;  %s765_s4 = smov [#allocation6]  }
  0x25   : > { %p605_p10 = scmp.ne.s32.totalorder %s862_s8, %s604_s30  ;;  %s609_s5 = sshll.u32 %s765_s4, 4  ;;  %s610_s5 = int_to_ptr.vmem [resolvable:$false] %s609_s5 }
  0x26   : > { %s611_s7 = scalar_lea.vmem %s610_s5, 256  ;;  %p612_p12 = scmp.lt.s32.totalorder %s862_s8, %s610_s5 }
  0x27   : > { %p607_p13 = pnand %p605_p10, %p871_p0  ;;  %p613_p8 = scmp.lt.s32.totalorder %s611_s7, %s604_s30 }
  0x29   : > { %p608_p1 = pneg %p607_p13  ;;  %p614_p3 = por %p613_p8, %p612_p12 }
  0x2b   : > { %p615_p4 = pnand %p614_p3, %p608_p1 }
  0x2d   : > { %618 = shalt.err (!%p615_p4)
}
  0x2e   : > { %526 = dma.hbm_to_vmem [thread:$0]  (!%p850_p11), %s859_s6, 128, %s862_s8, %s865_s9  }
  0x2f   : > { %p242_p2 = scmp.lt.s32.totalorder %s763_s17, 4  ;;  %p1019_p5 = scmp.ge.s32.totalorder %s763_s17, 1 }
  0x30   : > { %s906_s21 = scalar_lea.hbm %s1009_s0, %s841_s26  ;;  %s182_s22 = scalar_lea.vmem [#allocation3], %s848_s28 }
  0x31   : > { %p898_p6 = pnand %p1019_p5, %p242_p2  ;;  %s193_s24 = sshll.u32 %s182_s22, 4  ;;  %s194_s24 = int_to_ptr.vmem [resolvable:$true] %s193_s24 }
  0x32   : > { %s179_s6 = scalar_lea.sflag [#allocation4], %s178_s25  ;;  %s619_s8 = scalar_lea.hbm %s906_s21, 128 }
  0x33   : > { %s1020_s10 = scalar_select %p898_p6, 1, 0 }
  0x34   : > { %p620_p8 = scmp.ne.s32.totalorder %s906_s21, %s619_s8  ;;  %s624_s5 = scalar_lea.hbm %s1009_s0, 384 }
  0x35   : > { %p625_p9 = scmp.lt.u32.totalorder %s906_s21, %s1009_s0  ;;  %p626_p10 = scmp.lt.u32.totalorder %s624_s5, %s619_s8 }
  0x36   : > { %p622_p12 = pnand %p620_p8, %p871_p0  ;;  %p628_p1 = scmp.lt.u32.totalorder %s619_s8, %s906_s21 }
  0x37   : > { %p627_p13 = por %p626_p10, %p625_p9 }
  0x38   : > { %p623_p7 = pneg %p622_p12 }
  0x39   : > { %p629_p3 = por %p628_p1, %p627_p13 }
  0x3b   : > { %p630_p4 = pnand %p629_p3, %p623_p7 }
  0x3d   : > { %633 = shalt.err (!%p630_p4)
}
  0x3e   : > { %s634_s25 = scalar_lea.vmem %s194_s24, 128  ;;  %s766_s20 = smov [#allocation3]  }
  0x3f   : > { %p635_p2 = scmp.ne.s32.totalorder %s194_s24, %s634_s25  ;;  %s639_s22 = sshll.u32 %s766_s20, 4  ;;  %s640_s22 = int_to_ptr.vmem [resolvable:$false] %s639_s22 }
  0x40   : > { %s641_s30 = scalar_lea.vmem %s640_s22, 256  ;;  %p642_p12 = scmp.lt.s32.totalorder %s194_s24, %s640_s22 }
  0x41   : > { %p637_p5 = pnand %p635_p2, %p871_p0  ;;  %p643_p6 = scmp.lt.s32.totalorder %s641_s30, %s634_s25 }
  0x43   : > { %p638_p8 = pneg %p637_p5  ;;  %p644_p11 = por %p643_p6, %p642_p12 }
  0x45   : > { %p645_p9 = pnand %p644_p11, %p638_p8 }
  0x47   : > { %648 = shalt.err (!%p645_p9)
}
  0x48   : > { %p1021_p10 = scmp.ne.s32.totalorder %s1017_s29, 0  ;;  %s932_s5 = scalar_lea.hbm %s1011_s2, %s841_s26 }
  0x49   : > { %s226_s7 = scalar_lea.vmem [#allocation8], %s848_s28  ;;  %s649_s25 = scalar_lea.hbm %s932_s5, 128 }
  0x4a   : > { %523 = dma.hbm_to_vmem [thread:$0]  (!%p1021_p10), %s906_s21, 128, %s194_s24, %s179_s6  }
  0x4b   : > { %s237_s12 = sshll.u32 %s226_s7, 4  ;;  %p650_p11 = scmp.ne.s32.totalorder %s932_s5, %s649_s25  ;;  %s238_s12 = int_to_ptr.vmem [resolvable:$true] %s237_s12 }
  0x4c   : > { %s654_s21 = scalar_lea.hbm %s1011_s2, 384  ;;  %p655_p13 = scmp.lt.u32.totalorder %s932_s5, %s1011_s2 }
  0x4d   : > { %p652_p6 = pnand %p650_p11, %p871_p0  ;;  %p656_p1 = scmp.lt.u32.totalorder %s654_s21, %s649_s25 }
  0x4e   : > { %p658_p4 = scmp.lt.u32.totalorder %s649_s25, %s932_s5 }
  0x4f   : > { %p653_p7 = pneg %p652_p6  ;;  %p657_p3 = por %p656_p1, %p655_p13 }
  0x51   : > { %p659_p2 = por %p658_p4, %p657_p3 }
  0x53   : > { %p660_p5 = pnand %p659_p2, %p653_p7 }
  0x55   : > { %663 = shalt.err (!%p660_p5)
}
  0x56   : > { %s664_s26 = scalar_lea.vmem %s238_s12, 128  ;;  %s767_s28 = smov [#allocation8]  }
  0x57   : > { %p665_p8 = scmp.ne.s32.totalorder %s238_s12, %s664_s26  ;;  %s669_s30 = sshll.u32 %s767_s28, 4  ;;  %s670_s30 = int_to_ptr.vmem [resolvable:$false] %s669_s30 }
  0x58   : > { %s671_s8 = scalar_lea.vmem %s670_s30, 256  ;;  %p672_p11 = scmp.lt.s32.totalorder %s238_s12, %s670_s30 }
  0x59   : > { %p667_p12 = pnand %p665_p8, %p871_p0  ;;  %p673_p6 = scmp.lt.s32.totalorder %s671_s8, %s664_s26 }
  0x5b   : > { %p668_p9 = pneg %p667_p12  ;;  %p674_p10 = por %p673_p6, %p672_p11 }
  0x5d   : > { %p675_p1 = pnand %p674_p10, %p668_p9 }
  0x5f   : > { %678 = shalt.err (!%p675_p1)
}
  0x60   : > { %p1022_p13 = scmp.ne.s32.totalorder %s1017_s29, 0  ;;  %p1023_p7 = scmp.ne.s32.totalorder %s1020_s10, 0 }
  0x61   : > { %s248_s11 = sand.u32 (!%p1023_p7), 1, %s747_s13   ;;  %p1024_p0 = scmp.ne.s32.totalorder (!%p1023_p7), %s1016_s23, 0 }
  0x62   : > { %529 = dma.hbm_to_vmem [thread:$0]  (!%p1022_p13), %s932_s5, 128, %s238_s12, %s865_s9  }
  0x63   : > { %246 = sbr.rel (%p1023_p7) target bundleno = 471 (0x1d7), region = 32  ;;  %s500_s4 = sshll.u32 (!%p1023_p7), %s248_s11, 3 }
  0x64   : > { %s249_s7 = scalar_lea.sflag (!%p1023_p7), [#allocation4], %s248_s11  ;;  %s252_s25 = scalar_lea.vmem (!%p1023_p7), [#allocation3], %s500_s4 }
  0x6a   : > { %730 = dma.done.wait (%p1024_p0), %s249_s7, 128  }
  0x6b   : > { %732 = vsyncadd (%p1024_p0), %s249_s7, 4294967168  ;;  %s257_s29 = sand.u32 1, %s820_s18   ;;  %s261_s22 = scalar_lea.vmem [#allocation6], %s500_s4 }
  0x6c   : > { %s258_s20 = scalar_lea.sflag [#allocation7], %s257_s29 }
  0x6d   : > { %734 = dma.done.wait (%p1024_p0), %s258_s20, 256  }
  0x6e   : > { %736 = vsyncadd (%p1024_p0), %s258_s20, 4294967040  ;;  %s270_s9 = scalar_lea.vmem [#allocation8], %s500_s4  ;;  %p503_p10 = scmp.ne.s32.totalorder %s755_s15, 0 }
  0x6f   : > { %vm314_vm0 = vcmask (!%p503_p10), 7168   ;;  %v768_v0 = vmov (!%p503_p10), 0.0  }
  0x70   : > { %313 = sbr.rel (%p503_p10) target bundleno = 119 (0x77), region = 48  ;;  %315 = vst.msk [vmem:[#allocation2] sm:$0xff] (!%p503_p10), %vm314_vm0, %v768_v0 }
  0x77 PF: > { %v316_v1 = vld [vmem:[%s252_s25] sm:$0xff]  ;;  %v317_v2 = vld [vmem:[%s261_s22] sm:$0xff]  ;;  %v349_v13 = vlaneseq  ;;  %s504_s23 = sshll.u32 %s755_s15, 3  ;;  %vm357_vm6 = vcmask 7168   ;;  %p505_p3 = scmp.ne.s32.totalorder %s755_s15, 2 }
  0x78   : > { %v318_v3 = vld [vmem:[%s270_s9] sm:$0xff]  ;;  %v319_v4 = vsub.f32 %v316_v1, %v317_v2  ;;  %v351_v18 = vstv %s504_s23  ;;  %v355_v28 = vld [vmem:[#allocation2] sm:$0xff]  ;;  %v769_v33 = vmov (!%p505_p3), 0  }
  0x79   : > { %v321_v5 = vsub.f32 %v316_v1, %v318_v3  ;;  %v350_v16 = vshrl.u32 %v349_v13, 7  ;;  %588 = vset.pattern.permute.xlu0 (!%p505_p3), %v769_v33 }
  0x7a   : > { %v320_v6 = vadd.f32 1e-06, %v319_v4 }
  0x7b   : > { %v322_v7 = vadd.f32 1e-06, %v321_v5  ;;  %v352_v24 = vadd.s32 %v351_v18, %v350_v16 }
  0x7c   : > { %v323_v8 = vmul.f32 %v320_v6, %v320_v6 }
  0x7d   : > { %v333_v9 = vmul.f32 %v322_v7, %v322_v7  ;;  %vm353_vm5 = vcmp.lt.s32.totalorder %v352_v24, 24 }
  0x7e   : > { %324 = vadd.xlane.f32.xlu0 %v323_v8 }
  0x82   : > { %334 = vadd.xlane.f32.xlu0 %v333_v9 }
 0x10b   : > { %v325_v10 = vpop.xlane.xlu0 %324 }
 0x10c   : > { %584 = vrsqrt.f32 %v325_v10  ;;  %vm328_vm1 = vcmp.eq.f32.partialorder %v325_v10, inf  ;;  %v331_v20 = vand.u32 2147483648, %v325_v10  ;;  %vm330_vm3 = vcmp.eq.f32.partialorder %v325_v10, 0.0 }
 0x10f   : > { %v335_v11 = vpop.xlane.xlu0 %334 }
 0x110   : > { %586 = vrsqrt.f32 %v335_v11  ;;  %vm338_vm2 = vcmp.eq.f32.partialorder %v335_v11, inf  ;;  %v341_v21 = vand.u32 2147483648, %v335_v11  ;;  %vm340_vm4 = vcmp.eq.f32.partialorder %v335_v11, 0.0 }
 0x116   : > { %v585_v12 = vpop.eup %584 }
 0x117   : > { %v327_v14 = vmul.f32 %v585_v12, %v325_v10 }
 0x119   : > { %v329_v17 = vsel %vm328_vm1, %v325_v10, %v327_v14 }
 0x11a   : > { %v587_v15 = vpop.eup %586  ;;  %v332_v23 = vsel %vm330_vm3, %v331_v20, %v329_v17 }
 0x11b   : > { %v337_v19 = vmul.f32 %v587_v15, %v335_v11 }
 0x11d   : > { %v339_v22 = vsel %vm338_vm2, %v335_v11, %v337_v19 }
 0x11e   : > { %v342_v25 = vsel %vm340_vm4, %v341_v21, %v339_v22 }
 0x11f   : > { %v343_v26 = vsub.f32 %v332_v23, %v342_v25 }
 0x121   : > { %v344_v27 = vadd.f32 1.0, %v343_v26 }
 0x122   : > { %362 = sbr.rel (%p505_p3) target bundleno = 446 (0x1be), region = 52 }
 0x123   : > { %v345_v29 = vmax.f32 %v344_v27, 0.0 }
 0x125   : > { %v354_v30 = vsel %vm353_vm5, %v345_v29, 0.0 }
 0x126   : > { %v356_v31 = vadd.f32 %v355_v28, %v354_v30 }
 0x128   : > { %358 = vst.msk [vmem:[#allocation2] sm:$0xff] %vm357_vm6, %v356_v31 }
 0x12f   : > { %v363_v32 = vld [vmem:[#allocation2] sm:$0xff] }
 0x130   : > { %v364_v34 = vsel %vm357_vm6, %v363_v32, 0.0 }
 0x131   : > { %v365_v35 = vrot.slane %v364_v34, 4 }
 0x133   : > { %v366_v36 = vadd.f32 %v365_v35, %v364_v34 }
 0x135   : > { %v367_v37 = vrot.slane %v366_v36, 2 }
 0x137   : > { %v368_v38 = vadd.f32 %v367_v37, %v366_v36 }
 0x139   : > { %v369_v39 = vrot.slane %v368_v38, 1 }
 0x13b   : > { %v370_v40 = vadd.f32 %v369_v39, %v368_v38 }
 0x13d   : > { %373 = vperm.xlu0 %588, %v370_v40  }
 0x1bc   : > { %v374_v41 = vpop.permute.xlu0 %373 }
 0x1bd   : > { %376 = vst [vmem:[#allocation9] sm:$0xff] %v374_v41 }
 0x1be PF: > { %p531_p4 = scmp.eq.s32.totalorder %s820_s18, 2  ;;  %s770_s10 = smov [#allocation9]  }
 0x1bf   : > { %s386_s15 = sshll.u32 %s770_s10, 4  ;;  %s387_s15 = int_to_ptr.vmem [resolvable:$true] %s386_s15 }
 0x1c0   : > { %s679_s5 = scalar_lea.vmem %s387_s15, 128  ;;  %p686_p12 = scmp.lt.s32.totalorder %s387_s15, %s387_s15 }
 0x1c1   : > { %p680_p2 = scmp.ne.s32.totalorder %s387_s15, %s679_s5  ;;  %p687_p9 = scmp.lt.s32.totalorder %s679_s5, %s679_s5 }
 0x1c3   : > { %p681_p5 = pnand %p680_p2, %p531_p4  ;;  %p688_p11 = por %p687_p9, %p686_p12 }
 0x1c5   : > { %p682_p8 = pneg %p681_p5 }
 0x1c7   : > { %p689_p6 = pnand %p688_p11, %p682_p8 }
 0x1c9   : > { %692 = shalt.err (!%p689_p6)
}
 0x1ca   : > { %s693_s24 = scalar_lea.hbm %s1012_s3, 128 }
 0x1cb   : > { %p694_p1 = scmp.ne.s32.totalorder %s1012_s3, %s693_s24  ;;  %p699_p0 = scmp.lt.u32.totalorder %s693_s24, %s1012_s3 }
 0x1cd   : > { %p695_p13 = pnand %p694_p1, %p531_p4 }
 0x1cf   : > { %p696_p7 = pneg %p695_p13 }
 0x1d1   : > { %p701_p10 = pnand %p699_p0, %p696_p7 }
 0x1d3   : > { %704 = shalt.err (!%p701_p10)
}
 0x1d4   : > { %517 = dma.vmem_to_hbm [thread:$0]  (%p531_p4), %s387_s15, 128, %s1012_s3, [#allocation5]  }
 0x1d5   : > { %738 = dma.done.wait (%p531_p4), [#allocation5], 128  }
 0x1d6   : > { %740 = vsyncadd (%p531_p4), [#allocation5], 4294967168 }
 0x1d7 PF: > { %s20_s17 = sadd.s32 1, %s763_s17   ;;  %s1025_s12 = smov %s747_s13 }
 0x1d8   : > { %p17_p3 = scmp.ge.s32.totalorder %s20_s17, 5   ;;  %s1026_s13 = smov %s751_s14 }
 0x1d9   : > { %s1027_s14 = smov %s844_s27  ;;  %s1028_s15 = smov %s759_s16 }
 0x1da   : > { %s1029_s16 = smov %s1031_s19  ;;  %19 = sbr.rel (!%p17_p3) target bundleno = 7 (0x7), region = 102 }
 0x1e1   :  { %399 = vsyncpa [#allocation4], 1 }
 0x1e2   :  { %401 = vsyncpa [#allocation4 + $0x1], 1 }
 0x1e3   :  { %402 = vsyncpa [#allocation7], 1 }
 0x1e4   :  { %404 = vsyncpa [#allocation7 + $0x1], 1 }
 0x1e5   :  { %405 = vsyncpa [#allocation5], 1 }
 0x1e6   :  { %407 = vsyncpa [#allocation5 + $0x1], 1 }

</bundles_post_ra>
